<compile_context>
chip_gen: v6e
topology: v6e:2x2x1
jax: 0.10.0
libtpu: 0.0.40
codegen_flags: <defaults>
</compile_context>

<pallas_src>
import jax
import jax.numpy as jnp
from jax import lax
from jax.experimental import pallas as pl
from jax.experimental.pallas import tpu as pltpu


def _round_up(x, m):
    return ((x + m - 1) // m) * m


def _cdiv(a, b):
    return -(-a // b)


# ---------------------------------------------------------------------------
# Generation-aware VMEM budget (v5e/v6e: 128 MiB physical, v7x: 64 MiB).
# ---------------------------------------------------------------------------
def _vmem_capacity_bytes():
    try:
        return int(pltpu.get_tpu_info().vmem_capacity_bytes)
    except Exception:
        return 64 << 20  # conservative (v7x-sized) fallback


_VMEM_CAP = _vmem_capacity_bytes()
if _VMEM_CAP >= (96 << 20):            # v5e / v6e
    _VMEM_LIMIT = 100 << 20
    _TM_CAP, _TN_CAP, _TK_CAP = 1024, 512, 2048
else:                                  # v7x or unknown
    _VMEM_LIMIT = 48 << 20
    _TM_CAP, _TN_CAP, _TK_CAP = 512, 512, 1024
_VMEM_BUDGET = _VMEM_LIMIT - (6 << 20)   # headroom for compiler scratch


# ---------------------------------------------------------------------------
# Kernels
# ---------------------------------------------------------------------------
def _linear_kernel_resident(x_ref, w_ref, b_ref, o_ref):
    """Small-weight path: x:(tm,Kp) @ wT:(Kp,Np) + b:(1,Np); wT stays resident."""
    o_ref[...] = (
        jnp.dot(x_ref[...], w_ref[...], preferred_element_type=jnp.float32)
        + b_ref[...]
    ).astype(o_ref.dtype)


def _linear_kernel_tiled(x_ref, w_ref, b_ref, o_ref, acc_ref):
    """Tiled (M,N,K) path with f32 accumulator resident across the K axis."""
    k = pl.program_id(2)

    @pl.when(k == 0)
    def _init():
        acc_ref[...] = jnp.zeros_like(acc_ref)

    acc_ref[...] += jnp.dot(x_ref[...], w_ref[...],
                            preferred_element_type=jnp.float32)

    @pl.when(k == pl.num_programs(2) - 1)
    def _finalize():
        o_ref[...] = (acc_ref[...] + b_ref[...]).astype(o_ref.dtype)


# ---------------------------------------------------------------------------
# VMEM usage estimates (f32, double-buffered inputs/outputs).
# ---------------------------------------------------------------------------
def _resident_vmem_bytes(tm, kp, np_):
    return 4 * (2 * tm * kp + 2 * kp * np_ + 2 * np_ + 2 * tm * np_)


def _tiled_vmem_bytes(tm, tn, tk):
    return 4 * (2 * tm * tk + 2 * tk * tn + 2 * tn + 2 * tm * tn + tm * tn)


# ---------------------------------------------------------------------------
# Wrapper
# ---------------------------------------------------------------------------
@jax.jit
def linear_regression_forward(x, weight, bias):
    """yhat = x @ weight.T + bias  (weight in PyTorch [out, in] layout)."""
    B, in_size = x.shape
    out_size = weight.shape[0]

    np128 = _round_up(out_size, 128)   # lane-dense output width
    kp128 = _round_up(in_size, 128)

    cost = pl.CostEstimate(
        flops=2 * B * np128 * kp128,
        bytes_accessed=4 * (B * kp128 + kp128 * np128 + B * np128 + np128),
        transcendentals=0,
    )

    # ---------------- Path A: small weight -> weight^T fully resident -------
    tm_res = min(_TM_CAP, _round_up(B, 8))
    if B > 256 and _cdiv(B, tm_res) < 2:       # give megacore >= 2 M blocks
        tm_res = _round_up(_cdiv(B, 2), 8)
    while (_resident_vmem_bytes(tm_res, kp128, np128) > _VMEM_BUDGET
           and tm_res > 128):
        tm_res = max(128, _round_up(tm_res // 2, 8))

    weight_resident = (
        4 * kp128 * np128 <= (8 << 20)
        and _resident_vmem_bytes(tm_res, kp128, np128) <= _VMEM_BUDGET
    )

    if weight_resident:
        Kp, Np, tm = kp128, np128, tm_res
        x_p = x if Kp == in_size else jnp.pad(x, ((0, 0), (0, Kp - in_size)))
        w_p = weight if (Np == out_size and Kp == in_size) else jnp.pad(
            weight, ((0, Np - out_size), (0, Kp - in_size)))
        wt = w_p.T                               # (Kp, Np): one-time transpose
        b_p = (bias if Np == out_size
               else jnp.pad(bias, (0, Np - out_size))).reshape(1, Np)

        out_p = pl.pallas_call(
            _linear_kernel_resident,
            out_shape=jax.ShapeDtypeStruct((B, Np), x.dtype),
            grid_spec=pltpu.PrefetchScalarGridSpec(
                num_scalar_prefetch=0,
                grid=(_cdiv(B, tm),),
                in_specs=[
                    pl.BlockSpec((tm, Kp), lambda i: (i, 0)),   # x tile
                    pl.BlockSpec((Kp, Np), lambda i: (0, 0)),   # w^T (resident)
                    pl.BlockSpec((1, Np), lambda i: (0, 0)),    # bias (resident)
                ],
                out_specs=pl.BlockSpec((tm, Np), lambda i: (i, 0)),
            ),
            compiler_params=pltpu.CompilerParams(
                dimension_semantics=("parallel",),
                vmem_limit_bytes=_VMEM_LIMIT,
            ),
            cost_estimate=cost,
        )(x_p, wt, b_p)
        return out_p[:, :out_size]

    # ---------------- Path B: big weight -> tiled (M, N, K) grid ------------
    tm = min(_TM_CAP, _round_up(B, 8))
    tn = min(_TN_CAP, np128)
    tk = min(_TK_CAP, kp128)
    while _tiled_vmem_bytes(tm, tn, tk) > _VMEM_BUDGET:
        if tk > 128:
            tk = max(128, _round_up(tk // 2, 128))
        elif tn > 128:
            tn = max(128, _round_up(tn // 2, 128))
        elif tm > 64:
            tm = max(64, _round_up(tm // 2, 8))
        else:
            break
    if B > 256 and _cdiv(B, tm) * _cdiv(np128, tn) < 2:   # megacore split
        tm = _round_up(_cdiv(B, 2), 8)

    Np = _round_up(out_size, tn)
    Kp = _round_up(in_size, tk)

    x_p = x if Kp == in_size else jnp.pad(x, ((0, 0), (0, Kp - in_size)))
    w_p = weight if (Np == out_size and Kp == in_size) else jnp.pad(
        weight, ((0, Np - out_size), (0, Kp - in_size)))
    wt = w_p.T                                   # (Kp, Np)
    b_p = (bias if Np == out_size
           else jnp.pad(bias, (0, Np - out_size))).reshape(1, Np)

    grid = (_cdiv(B, tm), Np // tn, Kp // tk)

    out_p = pl.pallas_call(
        _linear_kernel_tiled,
        out_shape=jax.ShapeDtypeStruct((B, Np), x.dtype),
        grid_spec=pltpu.PrefetchScalarGridSpec(
            num_scalar_prefetch=0,
            grid=grid,
            in_specs=[
                pl.BlockSpec((tm, tk), lambda i, j, k: (i, k)),   # x
                pl.BlockSpec((tk, tn), lambda i, j, k: (k, j)),   # w^T
                pl.BlockSpec((1, tn), lambda i, j, k: (0, j)),    # bias
            ],
            out_specs=pl.BlockSpec((tm, tn), lambda i, j, k: (i, j)),
            scratch_shapes=[pltpu.VMEM((tm, tn), jnp.float32)],
        ),
        compiler_params=pltpu.CompilerParams(
            dimension_semantics=("parallel", "parallel", "arbitrary"),
            vmem_limit_bytes=_VMEM_LIMIT,
        ),
        cost_estimate=cost,
    )(x_p, wt, b_p)
    return out_p[:, :out_size]


if __name__ == "__main__":
    key = jax.random.PRNGKey(0)
    kx, kw, kb, kx2, kw2, kb2, kx3, kw3, kb3 = jax.random.split(key, 9)

    # --- Small shapes matching the "multiple linear regression" demo --------
    B, input_size, output_size = 8, 4, 2
    x = jax.random.normal(kx, (B, input_size), dtype=jnp.float32)
    bound = 1.0 / jnp.sqrt(jnp.float32(input_size))
    weight = jax.random.uniform(kw, (output_size, input_size),
                                minval=-bound, maxval=bound, dtype=jnp.float32)
    bias = jax.random.uniform(kb, (output_size,),
                              minval=-bound, maxval=bound, dtype=jnp.float32)

    yhat = jax.block_until_ready(linear_regression_forward(x, weight, bias))
    ref = jnp.dot(x, weight.T, precision=lax.Precision.HIGHEST) + bias
    assert yhat.shape == (B, output_size)
    assert jnp.allclose(yhat, ref, atol=1e-5, rtol=1e-5)

    # --- Medium shape: exercises the resident-weight fast path --------------
    B2, in2, out2 = 512, 1024, 384
    x2 = jax.random.normal(kx2, (B2, in2), dtype=jnp.float32)
    w2 = jax.random.normal(kw2, (out2, in2), dtype=jnp.float32) * 0.02
    b2 = jax.random.normal(kb2, (out2,), dtype=jnp.float32)
    y2 = jax.block_until_ready(linear_regression_forward(x2, w2, b2))
    ref2 = jnp.dot(x2, w2.T, precision=lax.Precision.HIGHEST) + b2
    assert y2.shape == (B2, out2)
    assert jnp.allclose(y2, ref2, atol=1e-3, rtol=1e-3)

    # --- Larger weight: exercises the tiled (M,N,K) path + M-edge masking ---
    B3, in3, out3 = 300, 2048, 2048
    x3 = jax.random.normal(kx3, (B3, in3), dtype=jnp.float32)
    w3 = jax.random.normal(kw3, (out3, in3), dtype=jnp.float32) * 0.02
    b3 = jax.random.normal(kb3, (out3,), dtype=jnp.float32)
    y3 = jax.block_until_ready(linear_regression_forward(x3, w3, b3))
    ref3 = jnp.dot(x3, w3.T, precision=lax.Precision.HIGHEST) + b3
    assert y3.shape == (B3, out3)
    assert jnp.allclose(y3, ref3, atol=1e-3, rtol=1e-3)

    print("KERNEL_OK")
</pallas_src>

<mosaic_0001>
module attributes {stable_mosaic.version = 11 : i64} {
  func.func @_linear_kernel_resident(%arg0: i32, %arg1: memref<8x128xf32, #tpu.memory_space<vmem>>, %arg2: memref<128x128xf32, #tpu.memory_space<vmem>>, %arg3: memref<1x128xf32, #tpu.memory_space<vmem>>, %arg4: memref<8x128xf32, #tpu.memory_space<vmem>>) attributes {dimension_semantics = [#tpu.dimension_semantics<parallel>], iteration_bounds = array<i64: 1>, scalar_prefetch = 0 : i64, scratch_operands = 0 : i64, tpu.core_type = #tpu.core_type<tc>, window_params = [{transform_indices = @transform_0, window_bounds = array<i64: 8, 128>}, {pipeline_mode = #tpu.pipeline_mode<synchronous>, transform_indices = @transform_1, window_bounds = array<i64: 128, 128>}, {pipeline_mode = #tpu.pipeline_mode<synchronous>, transform_indices = @transform_2, window_bounds = array<i64: 1, 128>}, {transform_indices = @transform_3, window_bounds = array<i64: 8, 128>}]} {
    %c0 = arith.constant 0 : index
    %c0_0 = arith.constant 0 : index
    %0 = vector.load %arg1[%c0, %c0_0] : memref<8x128xf32, #tpu.memory_space<vmem>>, vector<8x128xf32>
    %c0_1 = arith.constant 0 : index
    %c0_2 = arith.constant 0 : index
    %1 = vector.load %arg2[%c0_1, %c0_2] : memref<128x128xf32, #tpu.memory_space<vmem>>, vector<128x128xf32>
    %cst = arith.constant dense<0.000000e+00> : vector<8x128xf32>
    %2 = tpu.matmul %0, %1, %cst {dimension_numbers = #tpu.dot_dimension_numbers<[1], [0], [0], [1], [0, 0, 1, 1], [], []>} : vector<8x128xf32>, vector<128x128xf32>, vector<8x128xf32> -> vector<8x128xf32>
    %c0_3 = arith.constant 0 : index
    %c0_4 = arith.constant 0 : index
    %3 = vector.load %arg3[%c0_3, %c0_4] : memref<1x128xf32, #tpu.memory_space<vmem>>, vector<1x128xf32>
    %4 = vector.broadcast %3 : vector<1x128xf32> to vector<8x128xf32>
    %5 = arith.addf %2, %4 : vector<8x128xf32>
    %c0_5 = arith.constant 0 : index
    %c0_6 = arith.constant 0 : index
    %6 = vector.load %arg4[%c0_5, %c0_6] : memref<8x128xf32, #tpu.memory_space<vmem>>, vector<8x128xf32>
    tpu.vector_store %arg4[%c0_5, %c0_6], %5 {strides = array<i32>} : memref<8x128xf32, #tpu.memory_space<vmem>>, vector<8x128xf32>,
    return
  }
  func.func @transform_0(%arg0: i32) -> (i32, i32) {
    %c0_i32 = arith.constant 0 : i32
    %c0_i32_0 = arith.constant 0 : i32
    return %arg0, %c0_i32 : i32, i32
  }
  func.func @transform_1(%arg0: i32) -> (i32, i32) {
    %c0_i32 = arith.constant 0 : i32
    %c0_i32_0 = arith.constant 0 : i32
    %c0_i32_1 = arith.constant 0 : i32
    return %c0_i32, %c0_i32_0 : i32, i32
  }
  func.func @transform_2(%arg0: i32) -> (i32, i32) {
    %c0_i32 = arith.constant 0 : i32
    %c0_i32_0 = arith.constant 0 : i32
    %c0_i32_1 = arith.constant 0 : i32
    return %c0_i32, %c0_i32_0 : i32, i32
  }
  func.func @transform_3(%arg0: i32) -> (i32, i32) {
    %c0_i32 = arith.constant 0 : i32
    %c0_i32_0 = arith.constant 0 : i32
    return %arg0, %c0_i32 : i32, i32
  }
}

</mosaic_0001>

<bundles_post_ra>
// kernel: linear_regression_forward.1
= control target key start
LH: loop header
LB: loop body
LE: loop exit
PB: predicated region body
PF: predicated region fallthrough
CT: control target
= control target key end

     0   :  { %v168_v0 = vmov 0.0   ;;  %vm169_vm0 = vmmov 0   ;;  %s247_s1 = inlined_call_operand.vmem [shape: f32[128,128], index: 1, kind: input, shape index: {}]   ;;  %s248_s0 = inlined_call_operand.vmem [shape: f32[8,128], index: 0, kind: input, shape index: {}]   ;;  %s249_s2 = inlined_call_operand.vmem [shape: f32[1,128], index: 2, kind: input, shape index: {}]   ;;  %s250_s3 = inlined_call_operand.vmem [shape: f32[8,128], index: 3, kind: output, shape index: {}]  }
   0x1   :  { %131 = vmatprep.subr.mxu0 %v168_v0  ;;  %v30_v1 = vld [vmem:[%s247_s1 + $0x78] sm:$0xff]  ;;  %v29_v2 = vld [vmem:[%s247_s1 + $0x70] sm:$0xff]  ;;  %163 = vmatprep.mubr.msk.f32.mxu0 %vm169_vm0, %v168_v0  ;;  %v28_v3 = vld [vmem:[%s247_s1 + $0x68] sm:$0xff] }
   0x2   :  { %132 = vmatpush3.msra.mxu0 %v30_v1  ;;  %v27_v4 = vld [vmem:[%s247_s1 + $0x60] sm:$0xff]  ;;  %v26_v5 = vld [vmem:[%s247_s1 + $0x58] sm:$0xff]  ;;  %v25_v6 = vld [vmem:[%s247_s1 + $0x50] sm:$0xff] }
   0x3   :  { %133 = vmatprep.subr.mxu0 %v168_v0  ;;  %v24_v7 = vld [vmem:[%s247_s1 + $0x48] sm:$0xff]  ;;  %v23_v8 = vld [vmem:[%s247_s1 + $0x40] sm:$0xff]  ;;  %v22_v9 = vld [vmem:[%s247_s1 + $0x38] sm:$0xff] }
   0x4   :  { %134 = vmatpush3.msra.mxu0 %v29_v2  ;;  %v21_v10 = vld [vmem:[%s247_s1 + $0x30] sm:$0xff]  ;;  %v20_v11 = vld [vmem:[%s247_s1 + $0x28] sm:$0xff]  ;;  %v19_v12 = vld [vmem:[%s247_s1 + $0x20] sm:$0xff] }
   0x5   :  { %135 = vmatprep.subr.mxu0 %v168_v0  ;;  %v18_v13 = vld [vmem:[%s247_s1 + $0x18] sm:$0xff]  ;;  %v17_v14 = vld [vmem:[%s247_s1 + $0x10] sm:$0xff]  ;;  %v16_v15 = vld [vmem:[%s247_s1 + $0x8] sm:$0xff] }
   0x6   :  { %136 = vmatpush3.msra.mxu0 %v28_v3  ;;  %v15_v16 = vld [vmem:[%s247_s1] sm:$0xff] }
   0x7   :  { %137 = vmatprep.subr.mxu0 %v168_v0  ;;  %v14_v17 = vld [vmem:[%s248_s0] sm:$0xff] }
   0x8   :  { %138 = vmatpush3.msra.mxu0 %v27_v4  ;;  %v113_v18 = vld [vmem:[%s249_s2] ss:$0 sm:$0xff] }
   0x9   :  { %139 = vmatprep.subr.mxu0 %v168_v0 }
   0xa   :  { %140 = vmatpush3.msra.mxu0 %v26_v5 }
   0xb   :  { %141 = vmatprep.subr.mxu0 %v168_v0 }
   0xc   :  { %142 = vmatpush3.msra.mxu0 %v25_v6 }
   0xd   :  { %143 = vmatprep.subr.mxu0 %v168_v0 }
   0xe   :  { %144 = vmatpush3.msra.mxu0 %v24_v7 }
   0xf   :  { %145 = vmatprep.subr.mxu0 %v168_v0 }
  0x10   :  { %146 = vmatpush3.msra.mxu0 %v23_v8 }
  0x11   :  { %147 = vmatprep.subr.mxu0 %v168_v0 }
  0x12   :  { %148 = vmatpush3.msra.mxu0 %v22_v9 }
  0x13   :  { %149 = vmatprep.subr.mxu0 %v168_v0 }
  0x14   :  { %150 = vmatpush3.msra.mxu0 %v21_v10 }
  0x15   :  { %151 = vmatprep.subr.mxu0 %v168_v0 }
  0x16   :  { %152 = vmatpush3.msra.mxu0 %v20_v11 }
  0x17   :  { %153 = vmatprep.subr.mxu0 %v168_v0 }
  0x18   :  { %154 = vmatpush3.msra.mxu0 %v19_v12 }
  0x19   :  { %155 = vmatprep.subr.mxu0 %v168_v0 }
  0x1a   :  { %156 = vmatpush3.msra.mxu0 %v18_v13 }
  0x1b   :  { %157 = vmatprep.subr.mxu0 %v168_v0 }
  0x1c   :  { %158 = vmatpush3.msra.mxu0 %v17_v14 }
  0x1d   :  { %159 = vmatprep.subr.mxu0 %v168_v0 }
  0x1e   :  { %160 = vmatpush3.msra.mxu0 %v16_v15 }
  0x1f   :  { %161 = vmatprep.subr.mxu0 %v168_v0 }
  0x20   :  { %162 = vmatpush3.msra.mxu0 %v15_v16 }
  0x21   :  { %164 = vmatmul.mubr.f32.vlgmr.msra.gmra.mxu0 %v14_v17 }
  0xe1   :  { %v104_v19 = vpop.f32.mrf.mxu0 }
  0xe2   :  { %v105_v20 = vadd.f32 %v113_v18, %v104_v19 }
  0xe3   :  { %v165_v21 = vpop.f32.mrf.mxu0 }
  0xe4   :  { %108 = vst [vmem:[%s250_s3] sm:$0xff] %v105_v20 }

</bundles_post_ra>
